<compile_context>
chip_gen: v7x
topology: tpu7x:2x2x1
jax: 0.10.0
libtpu: 0.0.40
codegen_flags: <defaults>
</compile_context>

<pallas_src>
import jax
import jax.numpy as jnp
from jax.experimental import pallas as pl
from jax.experimental.pallas import tpu as pltpu


def _cdiv(a, b):
    return -(-a // b)


def _round_up(a, b):
    return _cdiv(a, b) * b


def _conv3_maxpool_bias(y, b, L, C):
    """y: (TB, L, 3C) f32 with tap-k columns at [k*C:(k+1)*C]; b: (1, C) f32."""
    # Valid conv positions p = 0..L-3: conv[p] = y[p, tap0] + y[p+1, tap1] + y[p+2, tap2].
    conv = (y[:, 0:L - 2, 0:C]
            + y[:, 1:L - 1, C:2 * C]
            + y[:, 2:L, 2 * C:3 * C])            # (TB, L-2, C) f32
    # Bias is constant over the pooled axis -> add it after the max pool.
    return jnp.max(conv, axis=1) + b             # (TB, C) f32


def seq_encoder_fused_kernel(ids_ref, tbl_ref, b_ref, o_ref):
    # ids_ref: (TB, L)  int32 token ids of TB (batch, timestep) rows
    # tbl_ref: (V, 3C)  bf16  fused table: tbl[v, k*C+c] = sum_e emb[v, e] * conv_w[c, e, k]
    # b_ref:   (1, C)   f32   conv bias
    # o_ref:   (TB, C)  f32   pooled output
    TB, L = ids_ref.shape
    V, C3 = tbl_ref.shape
    C = o_ref.shape[-1]

    # Embedding gather realized as a one-hot MXU matmul against the resident fused table.
    ids = ids_ref[...]
    vocab = jax.lax.broadcasted_iota(jnp.int32, (1, 1, V), 2)
    one_hot = (ids[:, :, None] == vocab).astype(jnp.bfloat16)      # (TB, L, V)

    y = jnp.dot(one_hot.reshape(TB * L, V), tbl_ref[...],
                preferred_element_type=jnp.float32)                # (TB*L, 3C) f32
    o_ref[...] = _conv3_maxpool_bias(y.reshape(TB, L, C3), b_ref[...], L, C)


def seq_encoder_embedded_kernel(x_ref, w_ref, b_ref, o_ref):
    # Fallback (large vocab): bf16 embedded activations streamed from HBM.
    # x_ref: (TB, L, E) bf16; w_ref: (E, 3C) bf16 tap-stacked; b_ref: (1, C) f32
    TB, L, E = x_ref.shape
    C3 = w_ref.shape[-1]
    C = o_ref.shape[-1]
    y = jnp.dot(x_ref[...].reshape(TB * L, E), w_ref[...],
                preferred_element_type=jnp.float32)                # (TB*L, 3C) f32
    o_ref[...] = _conv3_maxpool_bias(y.reshape(TB, L, C3), b_ref[...], L, C)


_VMEM_BUDGET = 26 * 1024 * 1024    # per-step working-set target (v7x guidance: < ~28 MiB)
_VMEM_LIMIT = 48 * 1024 * 1024     # scoped VMEM limit; leaves headroom on v7x's 64 MiB/TC


def _pick_block_rows(BS, L, E, C, V, fused, max_rows=1024):
    """Largest row-block (multiple of 8) whose estimated VMEM working set fits the budget."""
    lp = lambda n: _round_up(n, 128)          # lane padding of the minor dim
    if fused:
        per_row = (2 * lp(L) * 4              # ids block, double-buffered (int32)
                   + 2 * lp(C) * 4            # out block, double-buffered (f32)
                   + L * lp(V) * 2            # one-hot intermediate (bf16)
                   + L * lp(3 * C) * 4        # matmul result y (f32)
                   + 4 * L * lp(C) * 4)       # shifted tap slices + conv sum (f32), generous
    else:
        per_row = (2 * L * lp(E) * 2          # embedded block, double-buffered (bf16)
                   + 2 * lp(C) * 4
                   + L * lp(E) * 2            # flattened matmul LHS copy (bf16)
                   + L * lp(3 * C) * 4
                   + 4 * L * lp(C) * 4)
    tb = max(8, min(max_rows, _VMEM_BUDGET // per_row) // 8 * 8)
    tb = min(tb, _round_up(BS, 8))
    n = _cdiv(BS, tb)
    if BS > 8:
        # >= 2 (and even) grid steps so v7x's two TensorCores get balanced work;
        # costs at most one extra ~0.35us pipeline step on single-TC v5e/v6e.
        n = max(2, n)
        n += n % 2
        tb = max(8, min(tb, _round_up(_cdiv(BS, n), 8)))
    return tb


def sequence_encoder(x_tokens, emb_table, conv_w, conv_b):
    """x_tokens: (B, S, L) int32 -> (B, S, C) float32 (PyTorch SequenceEncoder.forward)."""
    B, S, L = x_tokens.shape
    V, E = emb_table.shape
    C, E_w, K = conv_w.shape
    if E_w != E or K != 3:
        raise ValueError("conv_w must have shape (out_channels, embedding_size, 3)")
    if L < K:
        raise ValueError(f"token length L={L} must be >= conv kernel size {K}")
    BS = B * S

    # Tap-stacked conv weight: w_stack[e, k*C + c] = conv_w[c, e, k]  -> (E, 3C).
    w_stack = jnp.transpose(conv_w, (1, 2, 0)).reshape(E, K * C).astype(jnp.float32)
    b_mat = conv_b.reshape(1, C).astype(jnp.float32)

    # One-hot gather + resident fused table only for small vocabularies
    # (V*3C*2 bytes resident and K=V one-hot matmul must stay cheap).
    fuse_gather = V <= 1024

    TB = _pick_block_rows(BS, L, E, C, V, fuse_gather)
    n_blocks = _cdiv(BS, TB)
    BS_pad = n_blocks * TB   # padded rows compute garbage and are sliced off below

    compiler_params = pltpu.CompilerParams(
        dimension_semantics=("parallel",),
        vmem_limit_bytes=_VMEM_LIMIT)

    if fuse_gather:
        # Embedding followed by the per-position linear tap is linear -> fold
        # emb_table @ w_stack into one (V, 3C) table, gathered in-kernel.
        fused_tbl = jnp.dot(emb_table.astype(jnp.float32), w_stack,
                            precision=jax.lax.Precision.HIGHEST).astype(jnp.bfloat16)
        ids = x_tokens.reshape(BS, L).astype(jnp.int32)
        if BS_pad != BS:
            ids = jnp.pad(ids, ((0, BS_pad - BS), (0, 0)))   # pad with id 0 (any valid id)
        out = pl.pallas_call(
            seq_encoder_fused_kernel,
            out_shape=jax.ShapeDtypeStruct((BS_pad, C), jnp.float32),
            grid_spec=pltpu.PrefetchScalarGridSpec(
                num_scalar_prefetch=0,
                grid=(n_blocks,),
                in_specs=[
                    pl.BlockSpec((TB, L), lambda i: (i, 0)),        # token ids
                    pl.BlockSpec((V, K * C), lambda i: (0, 0)),     # resident fused table
                    pl.BlockSpec((1, C), lambda i: (0, 0)),         # resident bias
                ],
                out_specs=pl.BlockSpec((TB, C), lambda i: (i, 0)),
            ),
            compiler_params=compiler_params,
        )(ids, fused_tbl, b_mat)
    else:
        # Large vocab: XLA gather outside the kernel.  Cast the table to bf16
        # BEFORE the gather so the materialized (BS, L, E) tensor is bf16.
        emb_bf16 = emb_table.astype(jnp.bfloat16)
        embedded = jnp.take(emb_bf16, x_tokens.reshape(BS, L), axis=0)    # (BS, L, E) bf16
        if BS_pad != BS:
            embedded = jnp.pad(embedded, ((0, BS_pad - BS), (0, 0), (0, 0)))
        out = pl.pallas_call(
            seq_encoder_embedded_kernel,
            out_shape=jax.ShapeDtypeStruct((BS_pad, C), jnp.float32),
            grid_spec=pltpu.PrefetchScalarGridSpec(
                num_scalar_prefetch=0,
                grid=(n_blocks,),
                in_specs=[
                    pl.BlockSpec((TB, L, E), lambda i: (i, 0, 0)),
                    pl.BlockSpec((E, K * C), lambda i: (0, 0)),     # resident weight
                    pl.BlockSpec((1, C), lambda i: (0, 0)),         # resident bias
                ],
                out_specs=pl.BlockSpec((TB, C), lambda i: (i, 0)),
            ),
            compiler_params=compiler_params,
        )(embedded, w_stack.astype(jnp.bfloat16), b_mat)

    return out[:BS].reshape(B, S, C)


def reference(x_tokens, emb_table, conv_w, conv_b):
    """Pure-JAX f32 reference matching the PyTorch forward."""
    B, S, L = x_tokens.shape
    C, E, K = conv_w.shape
    emb = jnp.take(emb_table, x_tokens, axis=0)               # (B, S, L, E)
    outs = []
    for t in range(S):
        e_t = emb[:, t]                                       # (B, L, E)
        cols = jnp.concatenate([e_t[:, k:L - 2 + k, :] for k in range(K)], axis=-1)
        conv = jnp.einsum("bpf,fc->bpc",
                          cols,
                          jnp.transpose(conv_w, (2, 1, 0)).reshape(K * E, C)) + conv_b
        outs.append(jnp.max(conv, axis=1))                    # (B, C)
    return jnp.stack(outs, axis=1)                            # (B, S, C)


if __name__ == "__main__":
    # Small shapes consistent with the module.
    B, S, L = 2, 8, 16          # batch, seq (outer time), token length per timestep
    V, E, C = 50, 32, 16        # vocab, embedding_size, out_channels
    padding_idx = 1

    key = jax.random.PRNGKey(0)
    k_tok, k_emb, k_w, k_b = jax.random.split(key, 4)

    x_tokens = jax.random.randint(k_tok, (B, S, L), 0, V, dtype=jnp.int32)

    # Deterministic parameter init (synthetic; padding_idx row zeroed like nn.Embedding).
    emb_table = jax.random.normal(k_emb, (V, E), dtype=jnp.float32)
    emb_table = emb_table.at[padding_idx].set(0.0)
    conv_w = 0.1 * jax.random.normal(k_w, (C, E, 3), dtype=jnp.float32)
    conv_b = 0.1 * jax.random.normal(k_b, (C,), dtype=jnp.float32)

    out = sequence_encoder(x_tokens, emb_table, conv_w, conv_b)
    out = jax.block_until_ready(out)

    ref = reference(x_tokens, emb_table, conv_w, conv_b)
    assert out.shape == (B, S, C)
    # bf16 MXU operands (f32 accumulation) -> loosened tolerance vs f32 reference.
    assert jnp.allclose(out, ref, atol=5e-2, rtol=5e-2), "mismatch vs reference"

    print("KERNEL_OK")
</pallas_src>

<mosaic_0001>
module attributes {stable_mosaic.version = 11 : i64} {
  func.func @seq_encoder_fused_kernel(%arg0: i32, %arg1: memref<8x16xi32, #tpu.memory_space<vmem>>, %arg2: memref<50x48xbf16, #tpu.memory_space<vmem>>, %arg3: memref<1x16xf32, #tpu.memory_space<vmem>>, %arg4: memref<8x16xf32, #tpu.memory_space<vmem>>) attributes {dimension_semantics = [#tpu.dimension_semantics<parallel>], iteration_bounds = array<i64: 2>, scalar_prefetch = 0 : i64, scratch_operands = 0 : i64, tpu.core_type = #tpu.core_type<tc>, window_params = [{transform_indices = @transform_0, window_bounds = array<i64: 8, 16>}, {pipeline_mode = #tpu.pipeline_mode<synchronous>, transform_indices = @transform_1, window_bounds = array<i64: 50, 48>}, {pipeline_mode = #tpu.pipeline_mode<synchronous>, transform_indices = @transform_2, window_bounds = array<i64: 1, 16>}, {transform_indices = @transform_3, window_bounds = array<i64: 8, 16>}]} {
    %c0 = arith.constant 0 : index
    %c0_0 = arith.constant 0 : index
    %0 = vector.load %arg1[%c0, %c0_0] : memref<8x16xi32, #tpu.memory_space<vmem>>, vector<8x16xi32>
    %1 = tpu.iota {dimensions = array<i32: 2>} : vector<1x1x50xi32>
    %2 = vector.shape_cast %0 : vector<8x16xi32> to vector<8x16x1xi32>
    %3 = vector.broadcast %2 : vector<8x16x1xi32> to vector<8x16x50xi32>
    %4 = vector.broadcast %1 : vector<1x1x50xi32> to vector<8x16x50xi32>
    %5 = arith.cmpi eq, %3, %4 : vector<8x16x50xi32>
    %6 = arith.extui %5 : vector<8x16x50xi1> to vector<8x16x50xi32>
    %7 = arith.sitofp %6 : vector<8x16x50xi32> to vector<8x16x50xf32>
    %8 = arith.truncf %7 : vector<8x16x50xf32> to vector<8x16x50xbf16>
    %9 = vector.shape_cast %8 : vector<8x16x50xbf16> to vector<128x50xbf16>
    %c0_1 = arith.constant 0 : index
    %c0_2 = arith.constant 0 : index
    %10 = vector.load %arg2[%c0_1, %c0_2] : memref<50x48xbf16, #tpu.memory_space<vmem>>, vector<50x48xbf16>
    %cst = arith.constant dense<0.000000e+00> : vector<128x48xf32>
    %11 = tpu.matmul %9, %10, %cst {dimension_numbers = #tpu.dot_dimension_numbers<[1], [0], [0], [1], [0, 0, 1, 1], [], []>} : vector<128x50xbf16>, vector<50x48xbf16>, vector<128x48xf32> -> vector<128x48xf32>
    %12 = vector.shape_cast %11 : vector<128x48xf32> to vector<8x16x48xf32>
    %c0_3 = arith.constant 0 : index
    %c0_4 = arith.constant 0 : index
    %13 = vector.load %arg3[%c0_3, %c0_4] : memref<1x16xf32, #tpu.memory_space<vmem>>, vector<1x16xf32>
    %14 = vector.extract_strided_slice %12 {offsets = [0, 0, 0], sizes = [8, 14, 16], strides = [1, 1, 1]} : vector<8x16x48xf32> to vector<8x14x16xf32>
    %15 = vector.extract_strided_slice %12 {offsets = [0, 1, 16], sizes = [8, 14, 16], strides = [1, 1, 1]} : vector<8x16x48xf32> to vector<8x14x16xf32>
    %16 = arith.addf %14, %15 : vector<8x14x16xf32>
    %17 = vector.extract_strided_slice %12 {offsets = [0, 2, 32], sizes = [8, 14, 16], strides = [1, 1, 1]} : vector<8x16x48xf32> to vector<8x14x16xf32>
    %18 = arith.addf %16, %17 : vector<8x14x16xf32>
    %cst_5 = arith.constant dense<0xFF800000> : vector<8x16xf32>
    %19 = vector.multi_reduction <maximumf>, %18, %cst_5 [1] : vector<8x14x16xf32> to vector<8x16xf32>
    %20 = vector.broadcast %13 : vector<1x16xf32> to vector<8x16xf32>
    %21 = arith.addf %19, %20 : vector<8x16xf32>
    %c0_6 = arith.constant 0 : index
    %c0_7 = arith.constant 0 : index
    %22 = vector.load %arg4[%c0_6, %c0_7] : memref<8x16xf32, #tpu.memory_space<vmem>>, vector<8x16xf32>
    tpu.vector_store %arg4[%c0_6, %c0_7], %21 {strides = array<i32>} : memref<8x16xf32, #tpu.memory_space<vmem>>, vector<8x16xf32>,
    return
  }
  func.func @transform_0(%arg0: i32) -> (i32, i32) {
    %c0_i32 = arith.constant 0 : i32
    %c0_i32_0 = arith.constant 0 : i32
    return %arg0, %c0_i32 : i32, i32
  }
  func.func @transform_1(%arg0: i32) -> (i32, i32) {
    %c0_i32 = arith.constant 0 : i32
    %c0_i32_0 = arith.constant 0 : i32
    %c0_i32_1 = arith.constant 0 : i32
    return %c0_i32, %c0_i32_0 : i32, i32
  }
  func.func @transform_2(%arg0: i32) -> (i32, i32) {
    %c0_i32 = arith.constant 0 : i32
    %c0_i32_0 = arith.constant 0 : i32
    %c0_i32_1 = arith.constant 0 : i32
    return %c0_i32, %c0_i32_0 : i32, i32
  }
  func.func @transform_3(%arg0: i32) -> (i32, i32) {
    %c0_i32 = arith.constant 0 : i32
    %c0_i32_0 = arith.constant 0 : i32
    return %arg0, %c0_i32 : i32, i32
  }
}

</mosaic_0001>

<bundles_post_ra>
// kernel: tpu_custom_call.1
= control target key start
LH: loop header
LB: loop body
LE: loop exit
PB: predicated region body
PF: predicated region fallthrough
CT: control target
= control target key end

     0   :  { %8 = vsyncpa [#allocation3], 0  ;;  %s1381_s0 = inlined_call_operand.vmem [shape: s32[16,16], index: 0, kind: input, shape index: {}]   ;;  %s1382_s1 = inlined_call_operand.vmem [shape: bf16[50,48], index: 1, kind: input, shape index: {}]   ;;  %s1383_s2 = inlined_call_operand.vmem [shape: f32[1,16], index: 2, kind: input, shape index: {}]   ;;  %s1384_s3 = inlined_call_operand.hbm [shape: f32[16,16], index: 3, kind: output, shape index: {}]  }
   0x1   :  { %10 = vsyncpa [#allocation3 + $0x1], 0  ;;  %s1074_s12 = smov 0   ;;  %s1076_s13 = smov 0  }
   0x2   :  { %s1078_s14 = smov 0   ;;  %s1080_s15 = smov 0  }
   0x3 LB: > { %s1095_s16 = sadd.s32 4294967295, %s1048_s15   ;;  %s855_s17 = sadd.s32 4294967294, %s1048_s15   ;;  %s1048_s15 = sphi %s1080_s15, %s1390_s15   ;;  %s1044_s14 = sphi %s1078_s14, %s1389_s14   ;;  %s1040_s13 = sphi %s1076_s13, %s1388_s13   ;;  %s1036_s12 = sphi %s1074_s12, %s1387_s12  }
   0x4   : > { %s1099_s18 = sadd.s32 1, %s1048_s15   ;;  %s91_s19 = sadd.s32 1, %s1044_s14 }
   0x5   : > { %s88_s20 = ssub.s32 %s1048_s15, %s1099_s18  ;;  %p101_p0 = scmp.ne.s32.totalorder %s1044_s14, %s1040_s13 }
   0x6   : > { %p89_p1 = scmp.eq.s32.totalorder %s88_s20, 0  ;;  %p102_p2 = scmp.eq.s32.totalorder %s1095_s16, 1 }
   0x7   : > { %p107_p3 = scmp.ne.s32.totalorder %s1040_s13, %s1036_s12  ;;  %p108_p4 = scmp.eq.s32.totalorder %s855_s17, 1 }
   0x8   : > { %s1110_s21 = scalar_select %p89_p1, %s1044_s14, %s91_s19  }
   0x9   : > { %p1112_p5 = por %p102_p2, %p101_p0  ;;  %p1116_p6 = por %p108_p4, %p107_p3 }
   0xa   : > { %p858_p7 = scmp.ge.s32.totalorder %s1048_s15, 1  ;;  %p139_p8 = scmp.lt.s32.totalorder %s1048_s15, 3 }
   0xc   : > { %p140_p9 = pnand %p858_p7, %p139_p8 }
   0xd   : > { %p162_p10 = scmp.lt.s32.totalorder (!%p140_p9), %s1095_s16, 1  ;;  %v168_v0 = vlaneseq (!%p140_p9)  ;;  %v982_v1 = vld [vmem:[%s1382_s1] sm:$0xff] (!%p140_p9)   ;;  %v983_v2 = vld [vmem:[%s1382_s1 + $0x8] sm:$0xff] (!%p140_p9)   ;;  %v984_v6 = vld [vmem:[%s1382_s1 + $0x10] sm:$0xff] (!%p140_p9)   ;;  %vm367_vm0 = vcmask (!%p140_p9), 1040384   ;;  %vm342_vm5 = vcmask (!%p140_p9), 408576  }
   0xe   : > { %143 = sbr.rel (%p140_p9) target bundleno = 580 (0x244), region = 32  ;;  %906 = vmatprep.subr.bf16.mxu0 (!%p140_p9), %v982_v1  ;;  %930 = vmatprep.subr.bf16.mxu1 (!%p140_p9), %v982_v1  ;;  %v985_v10 = vld [vmem:[%s1382_s1 + $0x18] ss:$0 sps:$4 sm:$0x11] (!%p140_p9)   ;;  %v1050_v29 = vmov (!%p140_p9), 0.0   ;;  %s1051_s10 = smov (!%p140_p9), 112  }
   0xf   : > { %v171_v3 = vshrl.u32 (!%p140_p9), %v168_v0, 7  ;;  %907 = vmatpush3.bf16.msra.mxu0 (!%p140_p9), %v982_v1  ;;  %934 = vmatpush3.bf16.msra.mxu1 (!%p140_p9), %v982_v1  ;;  %v369_v12 = vsel (!%p140_p9), %vm367_vm0, %v985_v10, 0  ;;  %v1139_v24 = vand.u32 (!%p140_p9), 127, %v168_v0  ;;  %s1052_s11 = smov (!%p140_p9), 96   ;;  %s159_s20 = sand.u32 (!%p140_p9), 1, %s1040_s13  }
  0x10   : > { %908 = vmatprep.subr.bf16.mxu0 (!%p140_p9), %v983_v2  ;;  %931 = vmatprep.subr.bf16.mxu1 (!%p140_p9), %v983_v2  ;;  %s859_s24 = sshll.u32 (!%p140_p9), %s159_s20, 3  ;;  %s891_s25 = sshll.u32 (!%p140_p9), %s1095_s16, 7 }
  0x11   : > { %v183_v4 = vsub.s32 (!%p140_p9), 1, %v171_v3  ;;  %v172_v5 = vsub.s32 (!%p140_p9), 0, %v171_v3  ;;  %v216_v11 = vsub.s32 (!%p140_p9), 4, %v171_v3  ;;  %v227_v14 = vsub.s32 (!%p140_p9), 5, %v171_v3  ;;  %s161_s26 = scalar_lea.vmem (!%p140_p9), [#allocation2], %s859_s24  ;;  %s1336_s30 = scalar_lea.hbm (!%p140_p9), %s1384_s3, %s891_s25 }
  0x12   : > { %v194_v16 = vsub.s32 (!%p140_p9), 2, %v171_v3  ;;  %v205_v18 = vsub.s32 (!%p140_p9), 3, %v171_v3  ;;  %v238_v20 = vsub.s32 (!%p140_p9), 6, %v171_v3  ;;  %v249_v22 = vsub.s32 (!%p140_p9), 7, %v171_v3  ;;  %s796_s27 = sshll.u32 (!%p140_p9), %s161_s26, 4  ;;  %s783_s4 = scalar_lea.sflag (!%p140_p9), [#allocation3], %s159_s20  ;;  %s1338_s27 = int_to_ptr.vmem [resolvable:$true] %s796_s27 }
  0x13   : > { %909 = vmatpush3.bf16.msra.mxu0 (!%p140_p9), %v983_v2  ;;  %935 = vmatpush3.bf16.msra.mxu1 (!%p140_p9), %v983_v2  ;;  %s1053_s5 = smov (!%p140_p9), [#allocation2]  }
  0x14   : > { %910 = vmatprep.subr.bf16.mxu0 (!%p140_p9), %v984_v6  ;;  %932 = vmatprep.subr.bf16.mxu1 (!%p140_p9), %v984_v6  ;;  %s990_s6 = sshll.u32 (!%p140_p9), %s1053_s5, 4  ;;  %s991_s6 = int_to_ptr.vmem [resolvable:$false] %s990_s6 }
  0x15   : > { %s163_s28 = scalar_select %p162_p10, %s1095_s16, 1 }
  0x16   : > { %s986_s16 = scalar_lea.vmem %s1338_s27, 128  ;;  %p993_p0 = scmp.lt.s32.totalorder %s1338_s27, %s991_s6 }
  0x17   : > { %s860_s29 = sshll.u32 %s163_s28, 3  ;;  %911 = vmatpush3.bf16.msra.mxu0 %v984_v6  ;;  %936 = vmatpush3.bf16.msra.mxu1 %v984_v6  ;;  %p987_p11 = scmp.ne.s32.totalorder %s1338_s27, %s986_s16 }
  0x18   : > { %s165_s7 = scalar_lea.vmem %s1381_s0, %s860_s29  ;;  %938 = vmatprep.subr.msk.bf16.mxu0 %vm367_vm0, %v985_v10  ;;  %939 = vmatprep.subr.msk.bf16.mxu1 %vm367_vm0, %v985_v10 }
  0x19   : > { %v167_v7 = vld [vmem:[%s165_s7] sm:$0xff]  ;;  %p988_p12 = pnand %p987_p11, %p1112_p5  ;;  %s992_s7 = scalar_lea.vmem %s991_s6, 256 }
  0x1a   : > { %v184_v8 = vrot.slane %v167_v7, %v183_v4  ;;  %v173_v9 = vrot.slane %v167_v7, %v172_v5  ;;  %v217_v13 = vrot.slane %v167_v7, %v216_v11  ;;  %v228_v15 = vrot.slane %v167_v7, %v227_v14  ;;  %p994_p1 = scmp.lt.s32.totalorder %s992_s7, %s986_s16 }
  0x1b   : > { %913 = vmatpush3.bf16.msra.mxu0 %v369_v12  ;;  %937 = vmatpush3.bf16.msra.mxu1 %v369_v12  ;;  %v195_v17 = vrot.slane %v167_v7, %v194_v16  ;;  %v206_v19 = vrot.slane %v167_v7, %v205_v18  ;;  %v239_v21 = vrot.slane %v167_v7, %v238_v20  ;;  %p989_p13 = pneg %p988_p12 }
  0x1c   : > { %186 = vbcast.lane.b32.xlu1 %v184_v8, 256  ;;  %175 = vbcast.lane.b32.xlu0 %v173_v9, 256  ;;  %v250_v23 = vrot.slane %v167_v7, %v249_v22  ;;  %p995_p2 = por %p994_p1, %p993_p0 }
  0x1e   : > { %p996_p3 = pnand %p995_p2, %p989_p13 }
  0x20   : > { %190 = vbcast.lane.b32.xlu1 %v184_v8, 264  ;;  %179 = vbcast.lane.b32.xlu0 %v173_v9, 264 }
  0x24   : > { %223 = vbcast.lane.b32.xlu1 %v217_v13, 264  ;;  %219 = vbcast.lane.b32.xlu0 %v217_v13, 256 }
  0x28   : > { %234 = vbcast.lane.b32.xlu1 %v228_v15, 264  ;;  %230 = vbcast.lane.b32.xlu0 %v228_v15, 256 }
  0x2c   : > { %201 = vbcast.lane.b32.xlu1 %v195_v17, 264  ;;  %197 = vbcast.lane.b32.xlu0 %v195_v17, 256 }
  0x30   : > { %212 = vbcast.lane.b32.xlu1 %v206_v19, 264  ;;  %208 = vbcast.lane.b32.xlu0 %v206_v19, 256 }
  0x34   : > { %245 = vbcast.lane.b32.xlu1 %v239_v21, 264  ;;  %241 = vbcast.lane.b32.xlu0 %v239_v21, 256 }
  0x38   : > { %256 = vbcast.lane.b32.xlu1 %v250_v23, 264  ;;  %252 = vbcast.lane.b32.xlu0 %v250_v23, 256 }
  0x8e   : > { %v187_v25 = vpop.permute.xlu1 %186  ;;  %v176_v26 = vpop.permute.xlu0 %175 }
  0x8f   : > { %vm260_vm1 = vcmp.eq.s32.totalorder %v187_v25, %v1139_v24  ;;  %vm258_vm2 = vcmp.eq.s32.totalorder %v176_v26, %v1139_v24 }
  0x90   : > { %v863_v30 = vsel %vm260_vm1, 1.0, %v1050_v29  ;;  %v861_v31 = vsel %vm258_vm2, 1.0, %v1050_v29  ;;  %vm485_vm2 = vcmask 1046528  }
  0x92   : > { %v191_v27 = vpop.permute.xlu1 %190  ;;  %v180_v28 = vpop.permute.xlu0 %179 }
  0x93   : > { %vm261_vm3 = vcmp.eq.s32.totalorder %v191_v27, %v1139_v24  ;;  %vm259_vm4 = vcmp.eq.s32.totalorder %v180_v28, %v1139_v24 }
  0x94   : > { %v864_v32 = vsel %vm261_vm3, 1.0, %v1050_v29  ;;  %v862_v33 = vsel %vm259_vm4, 1.0, %v1050_v29  ;;  %vm574_vm3 = vcmask 1045504   ;;  %vm665_vm4 = vcmask 128000  }
  0x95   : > { %v307_v34 = vpack.c.bf16 %v864_v32, %v863_v30  ;;  %v306_v35 = vpack.c.bf16 %v862_v33, %v861_v31 }
  0x96   : > { %v224_v36 = vpop.permute.xlu1 %223  ;;  %v220_v37 = vpop.permute.xlu0 %219 }
  0x97   : > { %vm267_vm6 = vcmp.eq.s32.totalorder %v224_v36, %v1139_v24  ;;  %vm266_vm7 = vcmp.eq.s32.totalorder %v220_v37, %v1139_v24  ;;  %914 = vmatprep.mubr.msk.bf16.mxu0 %vm342_vm5, %v306_v35 }
  0x98   : > { %v870_v38 = vsel %vm267_vm6, 1.0, %v1050_v29  ;;  %v869_v39 = vsel %vm266_vm7, 1.0, %v1050_v29  ;;  %915 = vmatmul.mubr.msk.bf16.vlgmr.msra.gmra.mrb[0].mxu0 %vm342_vm5, %v307_v34  ;;  %vm760_vm6 = vcmask 1041409   ;;  %vm763_vm7 = vcmask 1042434  }
  0x99   : > { %v310_v40 = vpack.c.bf16 %v870_v38, %v869_v39 }
  0x9a   : > { %v235_v41 = vpop.permute.xlu1 %234  ;;  %v231_v42 = vpop.permute.xlu0 %230 }
  0x9b   : > { %vm269_vm8 = vcmp.eq.s32.totalorder %v235_v41, %v1139_v24  ;;  %vm268_vm9 = vcmp.eq.s32.totalorder %v231_v42, %v1139_v24  ;;  %922 = vmatprep.mubr.msk.bf16.mxu1 %vm342_vm5, %v310_v40 }
  0x9c   : > { %v872_v43 = vsel %vm269_vm8, 1.0, %v1050_v29  ;;  %v871_v44 = vsel %vm268_vm9, 1.0, %v1050_v29  ;;  %vm766_vm8 = vcmask 1043459   ;;  %vm769_vm9 = vcmask 1044484  }
  0x9d   : > { %v311_v45 = vpack.c.bf16 %v872_v43, %v871_v44 }
  0x9e   : > { %v202_v46 = vpop.permute.xlu1 %201  ;;  %v198_v47 = vpop.permute.xlu0 %197 }
  0x9f   : > { %923 = vmatmul.mubr.msk.bf16.vlgmr.msra.gmra.mrb[0].mxu1 %vm342_vm5, %v311_v45  ;;  %vm263_vm10 = vcmp.eq.s32.totalorder %v202_v46, %v1139_v24  ;;  %vm262_vm11 = vcmp.eq.s32.totalorder %v198_v47, %v1139_v24 }
  0xa0   : > { %v866_v48 = vsel %vm263_vm10, 1.0, %v1050_v29  ;;  %v865_v49 = vsel %vm262_vm11, 1.0, %v1050_v29  ;;  %vm772_vm10 = vcmask 1045509   ;;  %vm775_vm11 = vcmask 1046534  }
  0xa1   : > { %v308_v50 = vpack.c.bf16 %v866_v48, %v865_v49 }
  0xa2   : > { %v213_v51 = vpop.permute.xlu1 %212  ;;  %v209_v52 = vpop.permute.xlu0 %208 }
  0xa3   : > { %vm265_vm12 = vcmp.eq.s32.totalorder %v213_v51, %v1139_v24  ;;  %vm264_vm13 = vcmp.eq.s32.totalorder %v209_v52, %v1139_v24  ;;  %918 = vmatprep.mubr.msk.bf16.mxu0 %vm342_vm5, %v308_v50 }
  0xa4   : > { %v868_v53 = vsel %vm265_vm12, 1.0, %v1050_v29  ;;  %v867_v54 = vsel %vm264_vm13, 1.0, %v1050_v29  ;;  %vm778_vm12 = vcmask 1047559  }
  0xa5   : > { %v309_v55 = vpack.c.bf16 %v868_v53, %v867_v54 }
  0xa6   : > { %v246_v56 = vpop.permute.xlu1 %245  ;;  %v242_v57 = vpop.permute.xlu0 %241 }
  0xa7   : > { %vm271_vm14 = vcmp.eq.s32.totalorder %v246_v56, %v1139_v24  ;;  %vm270_vm15 = vcmp.eq.s32.totalorder %v242_v57, %v1139_v24  ;;  %919 = vmatmul.mubr.msk.bf16.gmra.mrb[4].mxu0 %vm342_vm5, %v309_v55 }
  0xa8   : > { %v874_v58 = vsel %vm271_vm14, 1.0, %v1050_v29  ;;  %v873_v59 = vsel %vm270_vm15, 1.0, %v1050_v29 }
  0xa9   : > { %v312_v60 = vpack.c.bf16 %v874_v58, %v873_v59 }
  0xaa   : > { %v257_v61 = vpop.permute.xlu1 %256  ;;  %v253_v62 = vpop.permute.xlu0 %252 }
  0xab   : > { %vm273_vm0 = vcmp.eq.s32.totalorder %v257_v61, %v1139_v24  ;;  %vm272_vm1 = vcmp.eq.s32.totalorder %v253_v62, %v1139_v24  ;;  %926 = vmatprep.mubr.msk.bf16.mxu1 %vm342_vm5, %v312_v60 }
  0xac   : > { %v876_v63 = vsel %vm273_vm0, 1.0, %v1050_v29  ;;  %v875_v0 = vsel %vm272_vm1, 1.0, %v1050_v29 }
  0xad   : > { %v313_v1 = vpack.c.bf16 %v876_v63, %v875_v0 }
  0xaf   : > { %927 = vmatmul.mubr.msk.bf16.gmra.mrb[4].mxu1 %vm342_vm5, %v313_v1  ;;  %vm663_vm5 = vcmask 130048  }
 0x16b   : > { %v1165_v2 = vpop.f32.mrb[0].mxu0 }
 0x16c   : > { %v1167_v3 = vpop.f32.mrb[1].mxu0  ;;  %v489_v5 = vrot.slane %v1165_v2, 1  ;;  %v578_v6 = vrot.slane %v1165_v2, 2 }
 0x16d   : > { %v1169_v4 = vpop.f32.mrb[2].mxu0  ;;  %v486_v10 = vrot.slane %v1167_v3, 1  ;;  %v575_v11 = vrot.slane %v1167_v3, 2 }
 0x16e   : > { %v490_v7 = vrot.slane %v1169_v4, 1  ;;  %v579_v8 = vrot.slane %v1169_v4, 2  ;;  %v1175_v9 = vpop.f32.mrb[3].mxu0 }
 0x16f   : > { %v487_v12 = vrot.slane %v1175_v9, 1  ;;  %v576_v13 = vrot.slane %v1175_v9, 2 }
 0x170   : > { %516 = vrot.lane.b32.xlu1 %v490_v7, %s1051_s10  ;;  %v491_v14 = vsel %vm485_vm2, %v489_v5, %v490_v7  ;;  %v580_v15 = vsel %vm574_vm3, %v578_v6, %v579_v8 }
 0x171   : > { %514 = vrot.lane.b32.xlu0 %v491_v14, %s1051_s10  ;;  %v488_v16 = vsel %vm485_vm2, %v486_v10, %v487_v12  ;;  %v577_v17 = vsel %vm574_vm3, %v575_v11, %v576_v13 }
 0x172   : > { %v1189_v18 = vpop.f32.mrb[0].mxu1 }
 0x173   : > { %v501_v19 = vrot.slane %v1189_v18, 1  ;;  %v590_v20 = vrot.slane %v1189_v18, 2  ;;  %v1193_v21 = vpop.f32.mrb[1].mxu1 }
 0x174   : > { %605 = vrot.lane.b32.xlu1 %v579_v8, %s1052_s11  ;;  %v1196_v22 = vpop.f32.mrb[2].mxu1  ;;  %v498_v26 = vrot.slane %v1193_v21, 1  ;;  %v587_v27 = vrot.slane %v1193_v21, 2 }
 0x175   : > { %v502_v23 = vrot.slane %v1196_v22, 1  ;;  %v591_v24 = vrot.slane %v1196_v22, 2  ;;  %603 = vrot.lane.b32.xlu0 %v580_v15, %s1052_s11  ;;  %v1201_v25 = vpop.f32.mrb[3].mxu1 }
 0x176   : > { %v499_v28 = vrot.slane %v1201_v25, 1  ;;  %v588_v29 = vrot.slane %v1201_v25, 2 }
 0x177   : > { %v503_v30 = vsel %vm485_vm2, %v501_v19, %v502_v23  ;;  %v592_v31 = vsel %vm574_vm3, %v590_v20, %v591_v24 }
 0x178   : > { %532 = vrot.lane.b32.xlu1 %v502_v23, %s1051_s10  ;;  %v500_v32 = vsel %vm485_vm2, %v498_v26, %v499_v28  ;;  %v589_v33 = vsel %vm574_vm3, %v587_v27, %v588_v29 }
 0x179   : > { %530 = vrot.lane.b32.xlu0 %v503_v30, %s1051_s10 }
 0x17a   : > { %v1213_v34 = vpop.f32.mrb[4].mxu0 }
 0x17b   : > { %v495_v35 = vrot.slane %v1213_v34, 1  ;;  %v584_v36 = vrot.slane %v1213_v34, 2  ;;  %v1217_v37 = vpop.f32.mrb[5].mxu0 }
 0x17c   : > { %621 = vrot.lane.b32.xlu1 %v591_v24, %s1052_s11  ;;  %v492_v38 = vrot.slane %v1217_v37, 1  ;;  %v581_v39 = vrot.slane %v1217_v37, 2  ;;  %v1222_v40 = vpop.f32.mrb[6].mxu0 }
 0x17d   : > { %619 = vrot.lane.b32.xlu0 %v592_v31, %s1052_s11  ;;  %v496_v41 = vrot.slane %v1222_v40, 1  ;;  %v585_v42 = vrot.slane %v1222_v40, 2  ;;  %v1227_v43 = vpop.f32.mrb[7].mxu0 }
 0x17e   : > { %v493_v44 = vrot.slane %v1227_v43, 1  ;;  %v582_v45 = vrot.slane %v1227_v43, 2 }
 0x17f   : > { %v497_v46 = vsel %vm485_vm2, %v495_v35, %v496_v41  ;;  %v586_v47 = vsel %vm574_vm3, %v584_v36, %v585_v42 }
 0x180   : > { %512 = vrot.lane.b32.xlu1 %v487_v12, %s1051_s10  ;;  %v494_v48 = vsel %vm485_vm2, %v492_v38, %v493_v44  ;;  %v583_v49 = vsel %vm574_vm3, %v581_v39, %v582_v45 }
 0x181   : > { %510 = vrot.lane.b32.xlu0 %v488_v16, %s1051_s10 }
 0x182   : > { %v1237_v50 = vpop.f32.mrb[4].mxu1 }
 0x183   : > { %v507_v51 = vrot.slane %v1237_v50, 1  ;;  %v596_v52 = vrot.slane %v1237_v50, 2  ;;  %v1241_v53 = vpop.f32.mrb[5].mxu1 }
 0x184   : > { %528 = vrot.lane.b32.xlu1 %v499_v28, %s1051_s10  ;;  %v504_v54 = vrot.slane %v1241_v53, 1  ;;  %v593_v55 = vrot.slane %v1241_v53, 2  ;;  %v1246_v56 = vpop.f32.mrb[6].mxu1 }
 0x185   : > { %526 = vrot.lane.b32.xlu0 %v500_v32, %s1051_s10  ;;  %v508_v57 = vrot.slane %v1246_v56, 1  ;;  %v597_v58 = vrot.slane %v1246_v56, 2  ;;  %v1251_v59 = vpop.f32.mrb[7].mxu1 }
 0x186   : > { %v505_v60 = vrot.slane %v1251_v59, 1  ;;  %v594_v61 = vrot.slane %v1251_v59, 2 }
 0x187   : > { %v509_v62 = vsel %vm485_vm2, %v507_v51, %v508_v57  ;;  %v598_v63 = vsel %vm574_vm3, %v596_v52, %v597_v58 }
 0x188   : > { %601 = vrot.lane.b32.xlu1 %v576_v13, %s1052_s11  ;;  %v506_v0 = vsel %vm485_vm2, %v504_v54, %v505_v60  ;;  %v595_v1 = vsel %vm574_vm3, %v593_v55, %v594_v61 }
 0x189   : > { %599 = vrot.lane.b32.xlu0 %v577_v17, %s1052_s11 }
 0x18c   : > { %617 = vrot.lane.b32.xlu1 %v588_v29, %s1052_s11 }
 0x18d   : > { %615 = vrot.lane.b32.xlu0 %v589_v33, %s1052_s11 }
 0x190   : > { %524 = vrot.lane.b32.xlu1 %v496_v41, %s1051_s10 }
 0x191   : > { %522 = vrot.lane.b32.xlu0 %v497_v46, %s1051_s10 }
 0x194   : > { %613 = vrot.lane.b32.xlu1 %v585_v42, %s1052_s11 }
 0x195   : > { %611 = vrot.lane.b32.xlu0 %v586_v47, %s1052_s11 }
 0x198   : > { %540 = vrot.lane.b32.xlu1 %v508_v57, %s1051_s10 }
 0x199   : > { %538 = vrot.lane.b32.xlu0 %v509_v62, %s1051_s10 }
 0x19c   : > { %520 = vrot.lane.b32.xlu1 %v493_v44, %s1051_s10 }
 0x19d   : > { %518 = vrot.lane.b32.xlu0 %v494_v48, %s1051_s10 }
 0x1a0   : > { %609 = vrot.lane.b32.xlu1 %v582_v45, %s1052_s11 }
 0x1a1   : > { %607 = vrot.lane.b32.xlu0 %v583_v49, %s1052_s11 }
 0x1a4   : > { %536 = vrot.lane.b32.xlu1 %v505_v60, %s1051_s10 }
 0x1a5   : > { %534 = vrot.lane.b32.xlu0 %v506_v0, %s1051_s10 }
 0x1a8   : > { %625 = vrot.lane.b32.xlu1 %v594_v61, %s1052_s11 }
 0x1a9   : > { %623 = vrot.lane.b32.xlu0 %v595_v1, %s1052_s11 }
 0x1ac   : > { %629 = vrot.lane.b32.xlu1 %v597_v58, %s1052_s11 }
 0x1ad   : > { %627 = vrot.lane.b32.xlu0 %v598_v63, %s1052_s11 }
 0x1e2   : > { %v517_v5 = vpop.permute.xlu1 %516 }
 0x1e3   : > { %v515_v6 = vpop.permute.xlu0 %514  ;;  %v561_v7 = vadd.f32 %v1169_v4, %v517_v5  ;;  %v1301_v5 = vld [vmem:[%s1383_s2] ss:$0 sm:$0xff] }
 0x1e4   : > { %v560_v8 = vadd.f32 %v1165_v2, %v515_v6 }
 0x1e6   : > { %v606_v10 = vpop.permute.xlu1 %605 }
 0x1e7   : > { %v650_v11 = vadd.f32 %v606_v10, %v561_v7  ;;  %v604_v12 = vpop.permute.xlu0 %603 }
 0x1e8   : > { %v649_v13 = vadd.f32 %v604_v12, %v560_v8 }
 0x1e9   : > { %v675_v14 = vsel %vm665_vm4, %v650_v11, -inf }
 0x1ea   : > { %v674_v15 = vsel %vm663_vm5, %v649_v13, -inf  ;;  %v533_v16 = vpop.permute.xlu1 %532 }
 0x1eb   : > { %v676_v17 = vmax.f32 %v674_v15, %v675_v14  ;;  %v531_v19 = vpop.permute.xlu0 %530  ;;  %v569_v20 = vadd.f32 %v1196_v22, %v533_v16 }
 0x1ec   : > { %v568_v23 = vadd.f32 %v1189_v18, %v531_v19 }
 0x1ed   : > { %v677_v27 = vrot.slane %v676_v17, 4 }
 0x1ee   : > { %v622_v4 = vpop.permute.xlu1 %621 }
 0x1ef   : > { %v658_v24 = vadd.f32 %v622_v4, %v569_v20  ;;  %v620_v2 = vpop.permute.xlu0 %619  ;;  %v678_v33 = vmax.f32 %v676_v17, %v677_v27 }
 0x1f0   : > { %v657_v26 = vadd.f32 %v620_v2, %v568_v23 }
 0x1f1   : > { %v711_v28 = vsel %vm665_vm4, %v658_v24, -inf  ;;  %v679_v38 = vrot.slane %v678_v33, 2 }
 0x1f2   : > { %v710_v29 = vsel %vm663_vm5, %v657_v26, -inf  ;;  %v513_v30 = vpop.permute.xlu1 %512 }
 0x1f3   : > { %v712_v31 = vmax.f32 %v710_v29, %v711_v28  ;;  %v511_v32 = vpop.permute.xlu0 %510  ;;  %v559_v22 = vadd.f32 %v513_v30, %v1175_v9  ;;  %v680_v45 = vmax.f32 %v678_v33, %v679_v38 }
 0x1f4   : > { %v558_v18 = vadd.f32 %v511_v32, %v1167_v3 }
 0x1f5   : > { %v681_v57 = vrot.slane %v680_v45, 1  ;;  %v713_v2 = vrot.slane %v712_v31, 4 }
 0x1f6   : > { %v529_v35 = vpop.permute.xlu1 %528 }
 0x1f7   : > { %v527_v36 = vpop.permute.xlu0 %526  ;;  %v567_v46 = vadd.f32 %v529_v35, %v1201_v25  ;;  %v682_v0 = vmax.f32 %v680_v45, %v681_v57  ;;  %v714_v33 = vmax.f32 %v712_v31, %v713_v2 }
 0x1f8   : > { %v566_v48 = vadd.f32 %v527_v36, %v1193_v21 }
 0x1f9   : > { %v744_v13 = vadd.f32 %v1301_v5, %v682_v0 }
 0x1fa   : > { %v602_v39 = vpop.permute.xlu1 %601 }
 0x1fb   : > { %v648_v41 = vadd.f32 %v602_v39, %v559_v22  ;;  %v600_v42 = vpop.permute.xlu0 %599  ;;  %v759_v23 = vrot.slane %v744_v13, 7 }
 0x1fc   : > { %v647_v44 = vadd.f32 %v600_v42, %v558_v18 }
 0x1fd   : > { %v666_v47 = vsel %vm665_vm4, %v648_v41, -inf }
 0x1fe   : > { %v664_v49 = vsel %vm663_vm5, %v647_v44, -inf  ;;  %v618_v51 = vpop.permute.xlu1 %617  ;;  %v715_v44 = vrot.slane %v714_v33, 2 }
 0x1ff   : > { %v667_v52 = vmax.f32 %v664_v49, %v666_v47  ;;  %v656_v54 = vadd.f32 %v618_v51, %v567_v46  ;;  %v616_v55 = vpop.permute.xlu0 %615 }
 0x200   : > { %v655_v9 = vadd.f32 %v616_v55, %v566_v48 }
 0x201   : > { %v668_v3 = vrot.slane %v667_v52, 4  ;;  %v702_v58 = vsel %vm665_vm4, %v656_v54, -inf }
 0x202   : > { %v701_v60 = vsel %vm663_vm5, %v655_v9, -inf  ;;  %v525_v61 = vpop.permute.xlu1 %524 }
 0x203   : > { %v669_v62 = vmax.f32 %v667_v52, %v668_v3  ;;  %v703_v25 = vmax.f32 %v701_v60, %v702_v58  ;;  %v523_v63 = vpop.permute.xlu0 %522  ;;  %v565_v21 = vadd.f32 %v1222_v40, %v525_v61 }
 0x204   : > { %v564_v6 = vadd.f32 %v1213_v34, %v523_v63 }
 0x205   : > { %v670_v1 = vrot.slane %v669_v62, 2  ;;  %v704_v4 = vrot.slane %v703_v25, 4 }
 0x206   : > { %v614_v7 = vpop.permute.xlu1 %613 }
 0x207   : > { %v671_v8 = vmax.f32 %v669_v62, %v670_v1  ;;  %v654_v10 = vadd.f32 %v614_v7, %v565_v21  ;;  %v612_v11 = vpop.permute.xlu0 %611  ;;  %v705_v30 = vmax.f32 %v703_v25, %v704_v4 }
 0x208   : > { %v653_v12 = vadd.f32 %v612_v11, %v564_v6 }
 0x209   : > { %v672_v14 = vrot.slane %v671_v8, 1  ;;  %v693_v15 = vsel %vm665_vm4, %v654_v10, -inf  ;;  %v706_v41 = vrot.slane %v705_v30, 2 }
 0x20a   : > { %v692_v16 = vsel %vm663_vm5, %v653_v12, -inf  ;;  %v541_v40 = vpop.permute.xlu1 %540 }
 0x20b   : > { %v673_v17 = vmax.f32 %v671_v8, %v672_v14  ;;  %v694_v19 = vmax.f32 %v692_v16, %v693_v15  ;;  %v539_v20 = vpop.permute.xlu0 %538  ;;  %v707_v51 = vmax.f32 %v705_v30, %v706_v41  ;;  %v573_v61 = vadd.f32 %v1246_v56, %v541_v40 }
 0x20c   : > { %v572_v0 = vadd.f32 %v1237_v50, %v539_v20 }
 0x20d   : > { %v743_v34 = vadd.f32 %v1301_v5, %v673_v17  ;;  %v695_v24 = vrot.slane %v694_v19, 4  ;;  %v708_v60 = vrot.slane %v707_v51, 1 }
 0x20e   : > { %v521_v26 = vpop.permute.xlu1 %520 }
 0x20f   : > { %v1308_v27 = vsel %vm760_vm6, %v759_v23, %v743_v34  ;;  %v519_v28 = vpop.permute.xlu0 %518  ;;  %v696_v29 = vmax.f32 %v694_v19, %v695_v24  ;;  %v563_v32 = vadd.f32 %v521_v26, %v1227_v43  ;;  %v709_v11 = vmax.f32 %v707_v51, %v708_v60 }
 0x210   : > { %v562_v35 = vadd.f32 %v519_v28, %v1217_v37  ;;  %v716_v37 = vmax.f32 %v714_v33, %v715_v44 }
 0x211   : > { %v697_v18 = vrot.slane %v696_v29, 2  ;;  %v747_v19 = vadd.f32 %v1301_v5, %v709_v11 }
 0x212   : > { %v610_v36 = vpop.permute.xlu1 %609  ;;  %v717_v63 = vrot.slane %v716_v37, 1 }
 0x213   : > { %v652_v38 = vadd.f32 %v610_v36, %v563_v32  ;;  %v608_v22 = vpop.permute.xlu0 %607  ;;  %v698_v49 = vmax.f32 %v696_v29, %v697_v18  ;;  %v768_v29 = vrot.slane %v747_v19, 4 }
 0x214   : > { %v651_v39 = vadd.f32 %v608_v22, %v562_v35  ;;  %v718_v14 = vmax.f32 %v716_v37, %v717_v63 }
 0x215   : > { %v684_v42 = vsel %vm665_vm4, %v652_v38, -inf  ;;  %v699_v3 = vrot.slane %v698_v49, 1 }
 0x216   : > { %v683_v45 = vsel %vm663_vm5, %v651_v39, -inf  ;;  %v537_v46 = vpop.permute.xlu1 %536  ;;  %v748_v4 = vadd.f32 %v1301_v5, %v718_v14 }
 0x217   : > { %v685_v47 = vmax.f32 %v683_v45, %v684_v42  ;;  %v535_v48 = vpop.permute.xlu0 %534  ;;  %v571_v31 = vadd.f32 %v537_v46, %v1251_v59  ;;  %v700_v8 = vmax.f32 %v698_v49, %v699_v3 }
 0x218   : > { %v570_v52 = vadd.f32 %v535_v48, %v1241_v53  ;;  %v771_v35 = vrot.slane %v748_v4, 3 }
 0x219   : > { %v686_v43 = vrot.slane %v685_v47, 4  ;;  %v746_v17 = vadd.f32 %v1301_v5, %v700_v8 }
 0x21a   : > { %v626_v54 = vpop.permute.xlu1 %625 }
 0x21b   : > { %v687_v55 = vmax.f32 %v685_v47, %v686_v43  ;;  %v660_v9 = vadd.f32 %v626_v54, %v571_v31  ;;  %v624_v57 = vpop.permute.xlu0 %623  ;;  %v765_v28 = vrot.slane %v746_v17, 5 }
 0x21c   : > { %v659_v58 = vadd.f32 %v624_v57, %v570_v52 }
 0x21d   : > { %v688_v62 = vrot.slane %v687_v55, 2  ;;  %v720_v25 = vsel %vm665_vm4, %v660_v9, -inf }
 0x21e   : > { %v719_v59 = vsel %vm663_vm5, %v659_v58, -inf  ;;  %v630_v1 = vpop.permute.xlu1 %629 }
 0x21f   : > { %v689_v21 = vmax.f32 %v687_v55, %v688_v62  ;;  %v721_v53 = vmax.f32 %v719_v59, %v720_v25  ;;  %v662_v6 = vadd.f32 %v630_v1, %v573_v61  ;;  %v628_v7 = vpop.permute.xlu0 %627 }
 0x220   : > { %v661_v10 = vadd.f32 %v628_v7, %v572_v0 }
 0x221   : > { %v690_v12 = vrot.slane %v689_v21, 1  ;;  %v722_v13 = vrot.slane %v721_v53, 4  ;;  %v729_v56 = vsel %vm665_vm4, %v662_v6, -inf }
 0x222   : > { %v728_v15 = vsel %vm663_vm5, %v661_v10, -inf }
 0x223   : > { %v691_v16 = vmax.f32 %v689_v21, %v690_v12  ;;  %v723_v50 = vmax.f32 %v721_v53, %v722_v13  ;;  %v730_v40 = vmax.f32 %v728_v15, %v729_v56 }
 0x225   : > { %v745_v20 = vadd.f32 %v1301_v5, %v691_v16  ;;  %v724_v23 = vrot.slane %v723_v50, 2  ;;  %v731_v34 = vrot.slane %v730_v40, 4 }
 0x227   : > { %v762_v24 = vrot.slane %v745_v20, 6  ;;  %v725_v2 = vmax.f32 %v723_v50, %v724_v23  ;;  %v732_v26 = vmax.f32 %v730_v40, %v731_v34 }
 0x229   : > { %v764_v30 = vsel %vm763_vm7, %v762_v24, %v1308_v27  ;;  %v726_v32 = vrot.slane %v725_v2, 1  ;;  %v733_v33 = vrot.slane %v732_v26, 2 }
 0x22a   : > { %v767_v36 = vsel %vm766_vm8, %v765_v28, %v764_v30 }
 0x22b   : > { %v727_v38 = vmax.f32 %v725_v2, %v726_v32  ;;  %v734_v22 = vmax.f32 %v732_v26, %v733_v33  ;;  %v770_v18 = vsel %vm769_vm9, %v768_v29, %v767_v36 }
 0x22c   : > { %v773_v39 = vsel %vm772_vm10, %v771_v35, %v770_v18 }
 0x22d   : > { %v749_v41 = vadd.f32 %v1301_v5, %v727_v38  ;;  %v735_v42 = vrot.slane %v734_v22, 1 }
 0x22f   : > { %v774_v44 = vrot.slane %v749_v41, 2  ;;  %v736_v45 = vmax.f32 %v734_v22, %v735_v42 }
 0x231   : > { %v750_v27 = vadd.f32 %v1301_v5, %v736_v45  ;;  %v776_v46 = vsel %vm775_vm11, %v774_v44, %v773_v39 }
 0x233   : > { %v777_v47 = vrot.slane %v750_v27, 1 }
 0x235   : > { %v779_v48 = vsel %vm778_vm12, %v777_v47, %v776_v46 }
 0x236   : > { %781 = vst.msk [vmem:[%s161_s26] sm:$0xff] %vm663_vm5, %v779_v48 }
 0x237   : > { %999 = shalt.err (!%p996_p3)
}
 0x238   : > { %s1000_s8 = scalar_lea.hbm %s1336_s30, 128  ;;  %s1004_s11 = scalar_lea.hbm %s1384_s3, 256 }
 0x239   : > { %p1001_p4 = scmp.ne.s32.totalorder %s1336_s30, %s1000_s8  ;;  %p1005_p9 = scmp.lt.u32.totalorder %s1336_s30, %s1384_s3 }
 0x23a   : > { %p1006_p10 = scmp.lt.u32.totalorder %s1004_s11, %s1000_s8  ;;  %p1008_p12 = scmp.lt.u32.totalorder %s1000_s8, %s1336_s30 }
 0x23b   : > { %p1002_p7 = pnand %p1001_p4, %p1112_p5 }
 0x23c   : > { %p1007_p11 = por %p1006_p10, %p1005_p9 }
 0x23d   : > { %p1003_p8 = pneg %p1002_p7 }
 0x23e   : > { %p1009_p13 = por %p1008_p12, %p1007_p11 }
 0x240   : > { %p1010_p0 = pnand %p1009_p13, %p1003_p8 }
 0x242   : > { %1013 = shalt.err (!%p1010_p0)
}
 0x243   : > { %940 = dma.vmem_to_hbm [thread:$0]  (%p1112_p5), %s1338_s27, 128, %s1336_s30, %s783_s4  }
 0x244 PF: > { %p946_p1 = scmp.ge.s32.totalorder %s1048_s15, 2  ;;  %s808_s20 = sand.u32 1, %s1036_s12  }
 0x245   : > { %s809_s24 = scalar_lea.sflag [#allocation3], %s808_s20 }
 0x246   : > { %p943_p2 = pnand %p946_p1, %p1116_p6 }
 0x248   : > { %1031 = dma.done.wait (!%p943_p2), %s809_s24, 128  }
 0x249   : > { %1033 = vsyncadd (!%p943_p2), %s809_s24, 4294967168  ;;  %p13_p3 = scmp.ge.s32.totalorder %s1099_s18, 4   ;;  %s1387_s12 = smov %s1040_s13 }
 0x24a   : > { %s1388_s13 = smov %s1044_s14  ;;  %s1389_s14 = smov %s1110_s21 }
 0x24b   : > { %s1390_s15 = smov %s1099_s18  ;;  %15 = sbr.rel (!%p13_p3) target bundleno = 3 (0x3), region = 67 }
 0x252   :  { %814 = vsyncpa [#allocation3], 1 }
 0x253   :  { %816 = vsyncpa [#allocation3 + $0x1], 1 }

</bundles_post_ra>
